<compile_context>
chip_gen: v7x
topology: tpu7x:2x2x1
jax: 0.10.0
libtpu: 0.0.40
codegen_flags: <defaults>
</compile_context>

<pallas_src>
import functools
import math

import jax
import jax.numpy as jnp
from jax import lax, random
from jax.experimental import pallas as pl
from jax.experimental.pallas import tpu as pltpu


# ----------------------------------------------------------------------------
# helpers
# ----------------------------------------------------------------------------
def _round_up(x, m):
    return ((x + m - 1) // m) * m


def _pick_tm(M):
    if M >= 256 and M % 256 == 0:
        return 256           # fill the 256-row MXU on v6e/v7x
    if M >= 128:
        return 128
    return max(16, _round_up(M, 16))   # tiny-M stages (M = 1..64): no padding to 128


def _pick_tn(N):
    if N >= 256 and N % 256 == 0:
        return 256
    return 128


def _pick_tk(K):
    if K <= 128:
        return 128
    if K % 256 == 0:
        return 256
    if K % 128 == 0:
        return 128
    # irregular K: prefer the tile with less zero-padding
    return 256 if _round_up(K, 256) <= _round_up(K, 128) else 128


# ----------------------------------------------------------------------------
# Pallas kernel: tiled matmul with fused bias (+ optional activation) epilogue
#   MXU operands are bf16, accumulator / epilogue are f32.
# ----------------------------------------------------------------------------
def _matmul_kernel(a_ref, b_ref, bias_ref, o_ref, acc_ref, *, act):
    @pl.when(pl.program_id(2) == 0)
    def _():
        acc_ref[...] = jnp.zeros_like(acc_ref)

    acc_ref[...] += jnp.dot(a_ref[...], b_ref[...],
                            preferred_element_type=jnp.float32)

    @pl.when(pl.program_id(2) == pl.num_programs(2) - 1)
    def _():
        y = acc_ref[...] + bias_ref[...]
        if act == "silu":
            y = y * (1.0 / (1.0 + jnp.exp(-y)))
        o_ref[...] = y.astype(o_ref.dtype)


@functools.partial(jax.jit, static_argnames=("act",))
def matmul_bias_act(a, b, bias=None, *, act=None):
    """a: (M, K) f32/bf16, b: (K, N) bf16 (pre-transposed weight), bias: (N,) f32."""
    M, K = a.shape
    _, N = b.shape
    tm, tn, tk = _pick_tm(M), _pick_tn(N), _pick_tk(K)
    Mp, Kp, Np = _round_up(M, tm), _round_up(K, tk), _round_up(N, tn)

    a16 = a if a.dtype == jnp.bfloat16 else a.astype(jnp.bfloat16)
    b16 = b if b.dtype == jnp.bfloat16 else b.astype(jnp.bfloat16)
    if (Mp, Kp) != (M, K):
        a16 = jnp.pad(a16, ((0, Mp - M), (0, Kp - K)))
    if (Kp, Np) != (K, N):
        b16 = jnp.pad(b16, ((0, Kp - K), (0, Np - N)))

    if bias is None:
        bias_p = jnp.zeros((1, Np), jnp.float32)
    else:
        bias_p = bias.astype(jnp.float32)
        if Np != N:
            bias_p = jnp.pad(bias_p, (0, Np - N))
        bias_p = bias_p.reshape(1, Np)

    out = pl.pallas_call(
        functools.partial(_matmul_kernel, act=act),
        out_shape=jax.ShapeDtypeStruct((Mp, Np), jnp.float32),
        grid_spec=pltpu.PrefetchScalarGridSpec(
            num_scalar_prefetch=0,
            grid=(Mp // tm, Np // tn, Kp // tk),
            in_specs=[pl.BlockSpec((tm, tk), lambda i, j, k: (i, k)),
                      pl.BlockSpec((tk, tn), lambda i, j, k: (k, j)),
                      pl.BlockSpec((1, tn), lambda i, j, k: (0, j))],
            out_specs=pl.BlockSpec((tm, tn), lambda i, j, k: (i, j)),
            scratch_shapes=[pltpu.VMEM((tm, tn), jnp.float32)]),
        compiler_params=pltpu.CompilerParams(
            dimension_semantics=("parallel", "parallel", "arbitrary")),
    )(a16, b16, bias_p)
    if (Mp, Np) != (M, N):
        out = out[:M, :N]
    return out


def linear(x, p, act=None):
    """x: (..., Cin) f32, p['w']: (Cin, Cout) bf16 (pre-transposed), p['b']: (Cout,)|None."""
    shp = x.shape
    y = matmul_bias_act(x.reshape(-1, shp[-1]), p["w"], p["b"], act=act)
    return y.reshape(shp[:-1] + (p["w"].shape[1],))


# ----------------------------------------------------------------------------
# Pallas kernel: GroupNorm (32 groups) on channels-last slabs, fused SiLU
# ----------------------------------------------------------------------------
def _groupnorm_kernel(x_ref, g_ref, b_ref, o_ref, *, eps, groups, act):
    x = x_ref[0]                                      # (HW, C) f32
    HW, C = x.shape
    cg = C // groups
    inv_n = 1.0 / float(HW * cg)

    s1 = jnp.sum(x, axis=0, keepdims=True)            # (1, C)
    s2 = jnp.sum(x * x, axis=0, keepdims=True)        # (1, C)

    # group-membership masks via iota: stats as lane-dense MXU matmuls instead of
    # tiny-lane (G, Cg) reshapes of the channel dimension.
    c_idx = lax.broadcasted_iota(jnp.int32, (C, groups), 0)
    g_idx = lax.broadcasted_iota(jnp.int32, (C, groups), 1)
    mask = (c_idx // cg == g_idx).astype(jnp.float32)          # (C, G)
    g_idx_t = lax.broadcasted_iota(jnp.int32, (groups, C), 0)
    c_idx_t = lax.broadcasted_iota(jnp.int32, (groups, C), 1)
    mask_t = (c_idx_t // cg == g_idx_t).astype(jnp.float32)    # (G, C)

    gmean = jnp.dot(s1, mask, preferred_element_type=jnp.float32) * inv_n   # (1, G)
    gsq = jnp.dot(s2, mask, preferred_element_type=jnp.float32) * inv_n     # (1, G)
    gvar = gsq - gmean * gmean

    mean_c = jnp.dot(gmean, mask_t, preferred_element_type=jnp.float32)     # (1, C)
    var_c = jnp.dot(gvar, mask_t, preferred_element_type=jnp.float32)       # (1, C)

    y = (x - mean_c) * lax.rsqrt(var_c + eps)
    y = y * g_ref[...] + b_ref[...]
    if act == "silu":
        y = y * (1.0 / (1.0 + jnp.exp(-y)))
    o_ref[0] = y


@functools.partial(jax.jit, static_argnames=("eps", "act"))
def group_norm(x, gamma, beta, *, eps, act=None):
    """x: (B, H, W, C) NHWC, 32 groups over C."""
    B, H, W, C = x.shape
    HW = H * W
    xr = x.reshape(B, HW, C)
    out = pl.pallas_call(
        functools.partial(_groupnorm_kernel, eps=eps, groups=32, act=act),
        out_shape=jax.ShapeDtypeStruct((B, HW, C), jnp.float32),
        grid=(B,),
        in_specs=[pl.BlockSpec((1, HW, C), lambda b: (b, 0, 0)),
                  pl.BlockSpec((1, C), lambda b: (0, 0)),
                  pl.BlockSpec((1, C), lambda b: (0, 0))],
        out_specs=pl.BlockSpec((1, HW, C), lambda b: (b, 0, 0)),
        compiler_params=pltpu.CompilerParams(
            dimension_semantics=("parallel",)),
    )(xr, gamma.reshape(1, C), beta.reshape(1, C))
    return out.reshape(B, H, W, C)


# ----------------------------------------------------------------------------
# Pallas kernel: LayerNorm over last dim (lane-dense (M, C) slab)
# ----------------------------------------------------------------------------
def _layernorm_kernel(x_ref, g_ref, b_ref, o_ref, *, eps):
    x = x_ref[...]                                    # (M, C)
    mean = jnp.mean(x, axis=-1, keepdims=True)
    var = jnp.mean((x - mean) ** 2, axis=-1, keepdims=True)
    o_ref[...] = (x - mean) * lax.rsqrt(var + eps) * g_ref[...] + b_ref[...]


@functools.partial(jax.jit, static_argnames=("eps",))
def layer_norm(x, gamma, beta, eps=1e-5):
    shp = x.shape
    C = shp[-1]
    x2 = x.reshape(-1, C)
    out = pl.pallas_call(
        functools.partial(_layernorm_kernel, eps=eps),
        out_shape=jax.ShapeDtypeStruct(x2.shape, jnp.float32),
    )(x2, gamma.reshape(1, C), beta.reshape(1, C))
    return out.reshape(shp)


# ----------------------------------------------------------------------------
# Pallas kernel: multi-head softmax attention (all heads of a batch per step)
# ----------------------------------------------------------------------------
def _attention_kernel(q_ref, k_ref, v_ref, o_ref, *, scale):
    q = q_ref[...]                                    # (H, Sq, Dh) bf16
    k = k_ref[...]                                    # (H, Sk, Dh) bf16
    v = v_ref[...]                                    # (H, Sk, Dh) bf16
    s = jnp.einsum("hqd,hkd->hqk", q, k,
                   preferred_element_type=jnp.float32) * scale
    m = jnp.max(s, axis=-1, keepdims=True)
    p = jnp.exp(s - m)
    denom = jnp.sum(p, axis=-1, keepdims=True)
    p = p * pl.reciprocal(denom, approx=True)
    o_ref[...] = jnp.einsum("hqk,hkd->hqd", p.astype(jnp.bfloat16), v,
                            preferred_element_type=jnp.float32)


@functools.partial(jax.jit, static_argnames=("n_heads",))
def multihead_attention(q, k, v, *, n_heads):
    """q: (B, Sq, C) f32, k/v: (B, Sk, C) f32 -> (B, Sq, C) f32."""
    B, Sq, C = q.shape
    Sk = k.shape[1]
    Dh = C // n_heads
    scale = 1.0 / math.sqrt(Dh)

    def split(t, S):
        t = t.reshape(B, S, n_heads, Dh).transpose(0, 2, 1, 3)
        return t.reshape(B * n_heads, S, Dh).astype(jnp.bfloat16)

    qh, kh, vh = split(q, Sq), split(k, Sk), split(v, Sk)
    out = pl.pallas_call(
        functools.partial(_attention_kernel, scale=scale),
        out_shape=jax.ShapeDtypeStruct((B * n_heads, Sq, Dh), jnp.float32),
        grid=(B,),
        in_specs=[pl.BlockSpec((n_heads, Sq, Dh), lambda b: (b, 0, 0)),
                  pl.BlockSpec((n_heads, Sk, Dh), lambda b: (b, 0, 0)),
                  pl.BlockSpec((n_heads, Sk, Dh), lambda b: (b, 0, 0))],
        out_specs=pl.BlockSpec((n_heads, Sq, Dh), lambda b: (b, 0, 0)),
        compiler_params=pltpu.CompilerParams(
            dimension_semantics=("parallel",)),   # v7x: shard batch across 2 TCs
    )(qh, kh, vh)
    return out.reshape(B, n_heads, Sq, Dh).transpose(0, 2, 1, 3).reshape(B, Sq, C)


# ----------------------------------------------------------------------------
# Pallas kernel: SiLU (used once per forward for the time embedding)
# ----------------------------------------------------------------------------
def _silu_kernel(x_ref, o_ref):
    x = x_ref[...]
    o_ref[...] = x * (1.0 / (1.0 + jnp.exp(-x)))


@jax.jit
def silu(x):
    shp = x.shape
    flat = x.reshape(-1)
    n = flat.shape[0]
    npad = _round_up(n, 1024)
    x2 = flat if npad == n else jnp.pad(flat, (0, npad - n))
    x2 = x2.reshape(npad // 128, 128)
    out = pl.pallas_call(
        _silu_kernel,
        out_shape=jax.ShapeDtypeStruct(x2.shape, jnp.float32),
    )(x2)
    return out.reshape(-1)[:n].reshape(shp)


def gelu_exact(x):
    # TODO(synk): exact erf-based GELU gate kept in plain JAX (erf lowering in
    # Mosaic is not guaranteed); the surrounding matmuls are Pallas kernels.
    return jax.nn.gelu(x, approximate=False)


# ----------------------------------------------------------------------------
# Conv2d (NHWC im2col glue in JAX, bias-fused matmul in Pallas)
# ----------------------------------------------------------------------------
def conv2d(x, p, stride=1, act=None):
    """x: (B, H, W, Cin) NHWC; p['w']: (kh*kw*Cin, Cout) bf16; p['b']: (Cout,)."""
    B, H, W, Cin = x.shape
    k = p["k"]
    Cout = p["w"].shape[1]
    pad = (k - 1) // 2
    Ho = (H + 2 * pad - k) // stride + 1
    Wo = (W + 2 * pad - k) // stride + 1

    if k == 1 and stride == 1:
        col = x.reshape(B * H * W, Cin)
    else:
        xp = jnp.pad(x, ((0, 0), (pad, pad), (pad, pad), (0, 0))) if pad else x
        cols = []
        for ky in range(k):
            for kx in range(k):
                patch = lax.slice(
                    xp, (0, ky, kx, 0),
                    (B, ky + (Ho - 1) * stride + 1, kx + (Wo - 1) * stride + 1, Cin),
                    (1, stride, stride, 1))            # (B, Ho, Wo, Cin)
                cols.append(patch)
        # TODO(synk): 3x3 taps could be folded into the matmul reduction grid via
        # index_map over (ky, kx) instead of materializing the 9x col matrix.
        col = jnp.concatenate(cols, axis=-1).reshape(B * Ho * Wo, k * k * Cin)

    y = matmul_bias_act(col, p["w"], p["b"], act=act)
    return y.reshape(B, Ho, Wo, Cout)


def upsample_nearest2x(x):
    return jnp.repeat(jnp.repeat(x, 2, axis=1), 2, axis=2)


# ----------------------------------------------------------------------------
# parameter init (deterministic, synthetic) — weights pre-transformed + bf16
# ----------------------------------------------------------------------------
SCALE = 0.02


class KeyGen:
    def __init__(self, key):
        self.key = key

    def __call__(self):
        self.key, sub = random.split(self.key)
        return sub


def conv_params(kg, cin, cout, k):
    w = random.normal(kg(), (cout, cin, k, k), jnp.float32) * SCALE
    # torch (Cout, Cin, kh, kw) -> (kh*kw*Cin, Cout), matches im2col (ky, kx, cin) order
    wmat = w.transpose(2, 3, 1, 0).reshape(k * k * cin, cout).astype(jnp.bfloat16)
    return {"w": wmat, "b": jnp.zeros((cout,), jnp.float32), "k": k}


def linear_params(kg, cin, cout, bias=True):
    w = random.normal(kg(), (cout, cin), jnp.float32) * SCALE
    return {"w": w.T.astype(jnp.bfloat16),                     # (Cin, Cout)
            "b": jnp.zeros((cout,), jnp.float32) if bias else None}


def norm_params(c):
    return {"g": jnp.ones((c,), jnp.float32), "b": jnp.zeros((c,), jnp.float32)}


def res_params(kg, cin, cout, n_time=1280):
    return {"gn1": norm_params(cin),
            "conv1": conv_params(kg, cin, cout, 3),
            "time": linear_params(kg, n_time, cout),
            "gn2": norm_params(cout),
            "conv2": conv_params(kg, cout, cout, 3),
            "skip": None if cin == cout else conv_params(kg, cin, cout, 1)}


def attn_params(kg, n_heads, n_embed, d_prompt=768):
    c = n_heads * n_embed
    return {"n_heads": n_heads,
            "gn": norm_params(c),
            "conv_in": conv_params(kg, c, c, 1),
            "ln1": norm_params(c),
            "self_in": linear_params(kg, c, 3 * c, bias=False),
            "self_out": linear_params(kg, c, c),
            "ln2": norm_params(c),
            "q": linear_params(kg, c, c, bias=False),
            "k": linear_params(kg, d_prompt, c, bias=False),
            "v": linear_params(kg, d_prompt, c, bias=False),
            "cross_out": linear_params(kg, c, c),
            "ln3": norm_params(c),
            "lin1": linear_params(kg, c, 8 * c),
            "lin2": linear_params(kg, 4 * c, c),
            "conv_out": conv_params(kg, c, c, 1)}


def build_unet(key):
    kg = KeyGen(key)

    def conv_layer(cin, cout, stride=1):
        return ("conv", {"p": conv_params(kg, cin, cout, 3), "stride": stride})

    def res_layer(cin, cout):
        return ("res", res_params(kg, cin, cout))

    def attn_layer(h, e):
        return ("attn", attn_params(kg, h, e))

    def up_layer(c):
        return ("up", conv_params(kg, c, c, 3))

    encoders = [
        [conv_layer(4, 320)],
        [res_layer(320, 320), attn_layer(8, 40)],
        [res_layer(320, 320), attn_layer(8, 40)],
        [conv_layer(320, 320, stride=2)],
        [res_layer(320, 640), attn_layer(8, 80)],
        [res_layer(640, 640), attn_layer(8, 80)],
        [conv_layer(640, 640, stride=2)],
        [res_layer(640, 1280), attn_layer(8, 160)],
        [res_layer(1280, 1280), attn_layer(8, 160)],
        [conv_layer(1280, 1280, stride=2)],
        [res_layer(1280, 1280)],
        [res_layer(1280, 1280)],
    ]
    bottleneck = [res_layer(1280, 1280), attn_layer(8, 160),
                  res_layer(1280, 1280)]
    decoders = [
        [res_layer(2560, 1280)],
        [res_layer(2560, 1280)],
        [res_layer(2560, 1280), up_layer(1280)],
        [res_layer(2560, 1280), attn_layer(8, 160)],
        [res_layer(2560, 1280), attn_layer(8, 160)],
        [res_layer(1920, 1280), attn_layer(8, 160), up_layer(1280)],
        [res_layer(1920, 640), attn_layer(8, 80)],
        [res_layer(1280, 640), attn_layer(8, 80)],
        [res_layer(960, 640), attn_layer(8, 80), up_layer(640)],
        [res_layer(960, 320), attn_layer(8, 40)],
        [res_layer(640, 320), attn_layer(8, 40)],
        [res_layer(640, 320), attn_layer(8, 40)],
    ]
    return {"encoders": encoders, "bottleneck": bottleneck, "decoders": decoders}


# ----------------------------------------------------------------------------
# module forwards (activations in NHWC)
# ----------------------------------------------------------------------------
def self_attention_fwd(p, n_heads, x):
    qkv = linear(x, p["self_in"])
    q, k, v = jnp.split(qkv, 3, axis=-1)
    o = multihead_attention(q, k, v, n_heads=n_heads)
    return linear(o, p["self_out"])


def cross_attention_fwd(p, n_heads, x, prompt):
    q = linear(x, p["q"])
    k = linear(prompt, p["k"])
    v = linear(prompt, p["v"])
    o = multihead_attention(q, k, v, n_heads=n_heads)
    return linear(o, p["cross_out"])


def res_block_fwd(p, feature, time_act):
    """feature: (B, H, W, Cin); time_act: silu(time), (1, 1280)."""
    residue = feature
    h = group_norm(feature, p["gn1"]["g"], p["gn1"]["b"], eps=1e-5, act="silu")
    h = conv2d(h, p["conv1"], stride=1)
    t = linear(time_act, p["time"])                       # (1, Cout)
    h = h + t.reshape(1, 1, 1, -1)
    h = group_norm(h, p["gn2"]["g"], p["gn2"]["b"], eps=1e-5, act="silu")
    h = conv2d(h, p["conv2"], stride=1)
    res = residue if p["skip"] is None else conv2d(residue, p["skip"], stride=1)
    return h + res


def attn_block_fwd(p, x, prompt):
    n_heads = p["n_heads"]
    residue_end = x
    B, H, W, C = x.shape
    h = group_norm(x, p["gn"]["g"], p["gn"]["b"], eps=1e-6)
    h = conv2d(h, p["conv_in"], stride=1)
    h = h.reshape(B, H * W, C)                            # channels-last: pure reshape

    res = h
    hn = layer_norm(h, p["ln1"]["g"], p["ln1"]["b"], eps=1e-5)
    hn = self_attention_fwd(p, n_heads, hn)
    h = hn + res

    res = h
    hn = layer_norm(h, p["ln2"]["g"], p["ln2"]["b"], eps=1e-5)
    hn = cross_attention_fwd(p, n_heads, hn, prompt)
    h = hn + res

    res = h
    hn = layer_norm(h, p["ln3"]["g"], p["ln3"]["b"], eps=1e-5)
    hg = linear(hn, p["lin1"])
    a, gate = jnp.split(hg, 2, axis=-1)
    hn = a * gelu_exact(gate)
    hn = linear(hn, p["lin2"])
    h = hn + res

    h = h.reshape(B, H, W, C)
    h = conv2d(h, p["conv_out"], stride=1)
    return h + residue_end


def upsample_fwd(p, x):
    return conv2d(upsample_nearest2x(x), p, stride=1)


def switch_sequential_fwd(layers, x, prompt, time_act):
    for kind, p in layers:
        if kind == "conv":
            x = conv2d(x, p["p"], stride=p["stride"])
        elif kind == "res":
            x = res_block_fwd(p, x, time_act)
        elif kind == "attn":
            x = attn_block_fwd(p, x, prompt)
        elif kind == "up":
            x = upsample_fwd(p, x)
        else:
            raise ValueError(kind)
    return x


def unet_fwd(params, x, prompt, time):
    """x: (B, 4, H, W) NCHW (torch interface); returns (B, 320, H, W)."""
    x = x.transpose(0, 2, 3, 1)                 # NCHW -> NHWC, once
    time_act = silu(time)                       # hoisted: identical in every res block
    skips = []
    for layers in params["encoders"]:
        x = switch_sequential_fwd(layers, x, prompt, time_act)
        skips.append(x)
    x = switch_sequential_fwd(params["bottleneck"], x, prompt, time_act)
    for layers in params["decoders"]:
        x = jnp.concatenate([x, skips.pop()], axis=-1)   # channel concat (NHWC)
        x = switch_sequential_fwd(layers, x, prompt, time_act)
    return x.transpose(0, 3, 1, 2)              # NHWC -> NCHW, once


# ----------------------------------------------------------------------------
# main
# ----------------------------------------------------------------------------
if __name__ == "__main__":
    key = random.PRNGKey(0)
    pkey, xkey, ckey, tkey = random.split(key, 4)

    params = build_unet(pkey)

    B, H, W = 1, 16, 16
    x = random.normal(xkey, (B, 4, H, W), jnp.float32)          # latent (NCHW)
    prompt = random.normal(ckey, (B, 16, 768), jnp.float32)     # text context
    time = random.normal(tkey, (1, 1280), jnp.float32)          # time embedding

    out = unet_fwd(params, x, prompt, time)
    out = jax.block_until_ready(out)

    assert out.shape == (B, 320, H, W), out.shape
    assert bool(jnp.all(jnp.isfinite(out))), "non-finite output"
    print("KERNEL_OK")
</pallas_src>

<mosaic_0001>
module attributes {stable_mosaic.version = 11 : i64} {
  func.func @_silu_kernel(%arg0: memref<16x128xf32, #tpu.memory_space<vmem>>, %arg1: memref<16x128xf32, #tpu.memory_space<vmem>>) attributes {dimension_semantics = [], scalar_prefetch = 0 : i64, scratch_operands = 0 : i64, tpu.core_type = #tpu.core_type<tc>} {
    %c0 = arith.constant 0 : index
    %c0_0 = arith.constant 0 : index
    %0 = vector.load %arg0[%c0, %c0_0] : memref<16x128xf32, #tpu.memory_space<vmem>>, vector<16x128xf32>
    %cst = arith.constant 0.000000e+00 : f32
    %1 = vector.broadcast %cst : f32 to vector<16x128xf32>
    %2 = arith.subf %1, %0 : vector<16x128xf32>
    %3 = math.exp %2 : vector<16x128xf32>
    %cst_1 = arith.constant 1.000000e+00 : f32
    %4 = vector.broadcast %cst_1 : f32 to vector<16x128xf32>
    %5 = arith.addf %4, %3 : vector<16x128xf32>
    %cst_2 = arith.constant 1.000000e+00 : f32
    %6 = vector.broadcast %cst_2 : f32 to vector<16x128xf32>
    %7 = arith.divf %6, %5 : vector<16x128xf32>
    %8 = arith.mulf %0, %7 : vector<16x128xf32>
    %c0_3 = arith.constant 0 : index
    %c0_4 = arith.constant 0 : index
    %9 = vector.load %arg1[%c0_3, %c0_4] : memref<16x128xf32, #tpu.memory_space<vmem>>, vector<16x128xf32>
    tpu.vector_store %arg1[%c0_3, %c0_4], %8 {strides = array<i32>} : memref<16x128xf32, #tpu.memory_space<vmem>>, vector<16x128xf32>,
    return
  }
}

</mosaic_0001>

<bundles_post_ra>
// kernel: silu.1
= control target key start
LH: loop header
LB: loop body
LE: loop exit
PB: predicated region body
PF: predicated region fallthrough
CT: control target
= control target key end

     0   :  { %s60_s0 = inlined_call_operand.vmem [shape: f32[16,128], index: 0, kind: input, shape index: {}]   ;;  %s61_s1 = inlined_call_operand.vmem [shape: f32[16,128], index: 1, kind: output, shape index: {}]  }
   0x1   :  { %v8_v0 = vld [vmem:[%s60_s0] sm:$0xff]  ;;  %v9_v1 = vld [vmem:[%s60_s0 + $0x8] sm:$0xff] }
   0x2   :  { %v10_v2 = vsub.f32 0.0, %v8_v0  ;;  %v11_v3 = vsub.f32 0.0, %v9_v1 }
   0x4   :  { %v12_v4 = vmul.f32 1.442695, %v10_v2  ;;  %v14_v5 = vmul.f32 1.442695, %v11_v3 }
   0x6   :  { %30 = vpow2.f32 %v12_v4 }
   0x7   :  { %32 = vpow2.f32 %v14_v5 }
  0x10   :  { %v31_v6 = vpop.eup %30 }
  0x11   :  { %v33_v7 = vpop.eup %32  ;;  %v16_v8 = vadd.f32 1.0, %v31_v6 }
  0x12   :  { %v17_v9 = vadd.f32 1.0, %v33_v7 }
  0x13   :  { %34 = vrcp.f32 %v16_v8 }
  0x14   :  { %36 = vrcp.f32 %v17_v9 }
  0x1d   :  { %v35_v10 = vpop.eup %34 }
  0x1e   :  { %v37_v11 = vpop.eup %36  ;;  %v22_v12 = vmul.f32 %v35_v10, %v8_v0 }
  0x1f   :  { %v23_v13 = vmul.f32 %v37_v11, %v9_v1 }
  0x20   :  { %24 = vst [vmem:[%s61_s1] sm:$0xff] %v22_v12 }
  0x21   :  { %25 = vst [vmem:[%s61_s1 + $0x8] sm:$0xff] %v23_v13 }

</bundles_post_ra>
